<compile_context>
chip_gen: v6e
topology: v6e:2x2x1
jax: 0.10.0
libtpu: 0.0.40
codegen_flags: <defaults>
</compile_context>

<pallas_src>
import numpy as np

import jax
import jax.numpy as jnp
from jax import lax
from jax.experimental import pallas as pl
from jax.experimental.pallas import tpu as pltpu


def support_sets_kernel(mask_ref, ss_ref, alpha_ref, loggamma_ref, z_ref,
                        out_ref, acc_ref, gb_ref):
    """One (batch tile, dipole j) grid step.

    mask_ref     : (TB, K)   resident across the dipole axis
    ss_ref       : (K, D)    dipole-j slab of SUPPORT_SETS (leading axis squeezed)
    alpha_ref    : (K, 1)    dipole-j column of ALPHAS (leading axis squeezed)
    loggamma_ref : (K, 1)
    z_ref        : (TB, D)
    out_ref      : (TB, D)   written only on the last dipole step
    acc_ref      : (TB, D)   f32 accumulator scratch
    gb_ref       : (TB, 1)   f32 per-sample gamma scratch (computed at j == 0)
    """
    j = pl.program_id(1)
    mask = mask_ref[...]                                    # (TB, K)

    @pl.when(j == 0)
    def _init():
        acc_ref[...] = jnp.zeros_like(acc_ref)
        gb_ref[...] = jnp.exp(
            jnp.dot(mask, loggamma_ref[...],
                    preferred_element_type=jnp.float32))    # (TB, 1)

    z = z_ref[...]                                          # (TB, D)
    gb = gb_ref[...]                                        # (TB, 1)

    # Per-dipole support vectors / alphas for this batch tile (MXU matmuls).
    s_j = jnp.dot(mask, ss_ref[...],
                  preferred_element_type=jnp.float32)       # (TB, D)
    a_j = jnp.dot(mask, alpha_ref[...],
                  preferred_element_type=jnp.float32)       # (TB, 1)

    diff = z - s_j                                          # (TB, D)
    sq = jnp.sum(diff * diff, axis=1, keepdims=True)        # (TB, 1) ||z - s_j||^2
    w = (a_j * gb) * jnp.exp(-gb * sq)                      # (TB, 1) RBF weight
    acc_ref[...] = acc_ref[...] + w * diff

    @pl.when(j == pl.num_programs(1) - 1)
    def _finalize():
        # grad_f = -2 * acc ; the factor 2 cancels in the normalization.
        grad = -acc_ref[...]
        ssq = jnp.sum(grad * grad, axis=1, keepdims=True)
        # NOTE: like the PyTorch module, no epsilon — a zero gradient gives NaN.
        out_ref[...] = (grad * lax.rsqrt(ssq)).astype(out_ref.dtype)


def support_sets_forward(mask, support_sets, alphas, loggamma, z, *,
                         num_dipoles, batch_tile=None):
    B, K = mask.shape
    D = z.shape[1]
    n2 = 2 * num_dipoles
    assert support_sets.shape == (K, n2 * D)
    assert alphas.shape == (K, n2)
    assert loggamma.shape == (K, 1)

    TB = B if batch_tile is None else batch_tile
    assert B % TB == 0, "batch must be divisible by the batch tile"

    # Layout plumbing (wrapper side, one-time): expose the dipole axis as a
    # leading, gridable dimension so each grid step streams only one (K, D)
    # slab and one (K, 1) alpha column; last-two block dims == full dims.
    ss3 = jnp.transpose(support_sets.reshape(K, n2, D), (1, 0, 2))   # (2N, K, D)
    al3 = jnp.transpose(alphas, (1, 0))[:, :, None]                  # (2N, K, 1)

    grid = (B // TB, n2)   # reduction (dipole) axis last

    return pl.pallas_call(
        support_sets_kernel,
        out_shape=jax.ShapeDtypeStruct((B, D), jnp.float32),
        grid=grid,
        in_specs=[
            pl.BlockSpec((TB, K), lambda i, j: (i, 0)),          # mask tile
            pl.BlockSpec((None, K, D), lambda i, j: (j, 0, 0)),  # SS dipole slab
            pl.BlockSpec((None, K, 1), lambda i, j: (j, 0, 0)),  # alpha column
            pl.BlockSpec((K, 1), lambda i, j: (0, 0)),           # loggamma (full)
            pl.BlockSpec((TB, D), lambda i, j: (i, 0)),          # z tile
        ],
        out_specs=pl.BlockSpec((TB, D), lambda i, j: (i, 0)),
        scratch_shapes=[
            pltpu.VMEM((TB, D), jnp.float32),   # acc
            pltpu.VMEM((TB, 1), jnp.float32),   # gamma per sample
        ],
        compiler_params=pltpu.CompilerParams(
            dimension_semantics=("parallel", "arbitrary")),
    )(mask, ss3, al3, loggamma, z)


def init_support_sets_params(key, num_support_sets, num_support_dipoles,
                             support_vectors_dim, lss_beta=0.5, jung_radius=1.0):
    """Deterministic re-implementation of SupportSets.__init__ (no prompt_features)."""
    K, N, D = num_support_sets, num_support_dipoles, support_vectors_dim
    r_min, r_max = 0.9 * jung_radius, 1.25 * jung_radius
    radii = np.arange(r_min, r_max, (r_max - r_min) / K, dtype=np.float64)[:K]

    ss = np.zeros((K, 2 * N, D), dtype=np.float32)
    for k in range(K):
        sv_set = []
        for i in range(N):
            sv = np.asarray(
                jax.random.normal(jax.random.fold_in(key, k * N + i), (1, D)),
                dtype=np.float32)
            sv_set.extend([sv, -sv])
        sv_set = np.concatenate(sv_set, axis=0)                          # (2N, D)
        sv_set = radii[k] * sv_set / np.linalg.norm(sv_set, axis=1, keepdims=True)
        ss[k] = sv_set
    SUPPORT_SETS = ss.reshape(K, 2 * N * D)

    ALPHAS = np.tile(np.array([1.0, -1.0], dtype=np.float32), (K, N))    # (K, 2N)

    gammas = -np.log(lss_beta) / (2.0 * radii) ** 2
    LOGGAMMA = np.log(gammas).astype(np.float32).reshape(K, 1)

    return (jnp.asarray(SUPPORT_SETS), jnp.asarray(ALPHAS), jnp.asarray(LOGGAMMA))


def reference_forward(mask, support_sets, alphas, loggamma, z, num_dipoles):
    """Plain-JAX transcription of the PyTorch forward, for validation."""
    B = mask.shape[0]
    D = z.shape[1]
    with jax.default_matmul_precision("highest"):
        ssb = (mask @ support_sets).reshape(B, 2 * num_dipoles, D)
        ab = (mask @ alphas)[:, :, None]
        gb = jnp.exp(mask @ loggamma)[:, :, None]
    Dm = z[:, None, :] - ssb
    grad = -2.0 * (ab * gb * jnp.exp(-gb * jnp.sum(Dm ** 2, axis=2, keepdims=True))
                   * Dm).sum(axis=1)
    return grad / jnp.linalg.norm(grad, axis=1, keepdims=True)


if __name__ == "__main__":
    key = jax.random.PRNGKey(0)

    # Small synthetic configuration consistent with the module
    # (D chosen as a multiple of 128 so all tiles are lane-dense).
    K = 4     # num_support_sets
    N = 2     # num_support_dipoles  (2N = 4 dipole vectors)
    D = 128   # support_vectors_dim
    B = 16    # batch
    TB = 8    # batch tile -> grid = (2, 4)

    SUPPORT_SETS, ALPHAS, LOGGAMMA = init_support_sets_params(
        key, K, N, D, lss_beta=0.5, jung_radius=1.0)

    k_idx, k_z = jax.random.split(jax.random.fold_in(key, 1234))
    idx = jax.random.randint(k_idx, (B,), 0, K)
    support_sets_mask = jax.nn.one_hot(idx, K, dtype=jnp.float32)   # (B, K)
    z = jax.random.normal(k_z, (B, D), dtype=jnp.float32)           # (B, D)

    out = support_sets_forward(support_sets_mask, SUPPORT_SETS, ALPHAS, LOGGAMMA, z,
                               num_dipoles=N, batch_tile=TB)
    out = jax.block_until_ready(out)

    ref = reference_forward(support_sets_mask, SUPPORT_SETS, ALPHAS, LOGGAMMA, z, N)
    assert out.shape == (B, D)
    assert jnp.allclose(out, ref, atol=2e-4, rtol=2e-4), \
        "Pallas kernel mismatch vs reference"

    print("KERNEL_OK")
</pallas_src>

<mosaic_0001>
module attributes {stable_mosaic.version = 11 : i64} {
  func.func @support_sets_kernel(%arg0: i32, %arg1: i32, %arg2: memref<8x4xf32, #tpu.memory_space<vmem>>, %arg3: memref<1x4x128xf32, #tpu.memory_space<vmem>>, %arg4: memref<1x4x1xf32, #tpu.memory_space<vmem>>, %arg5: memref<4x1xf32, #tpu.memory_space<vmem>>, %arg6: memref<8x128xf32, #tpu.memory_space<vmem>>, %arg7: memref<8x128xf32, #tpu.memory_space<vmem>>, %arg8: memref<8x128xf32, #tpu.memory_space<vmem>>, %arg9: memref<8x1xf32, #tpu.memory_space<vmem>>) attributes {dimension_semantics = [#tpu.dimension_semantics<parallel>, #tpu.dimension_semantics<arbitrary>], iteration_bounds = array<i64: 2, 4>, scalar_prefetch = 0 : i64, scratch_operands = 2 : i64, tpu.core_type = #tpu.core_type<tc>, window_params = [{transform_indices = @transform_0, window_bounds = array<i64: 8, 4>}, {transform_indices = @transform_1, window_bounds = array<i64: 1, 4, 128>}, {transform_indices = @transform_2, window_bounds = array<i64: 1, 4, 1>}, {pipeline_mode = #tpu.pipeline_mode<synchronous>, transform_indices = @transform_3, window_bounds = array<i64: 4, 1>}, {transform_indices = @transform_4, window_bounds = array<i64: 8, 128>}, {transform_indices = @transform_5, window_bounds = array<i64: 8, 128>}]} {
    %c0 = arith.constant 0 : index
    %c0_0 = arith.constant 0 : index
    %0 = vector.load %arg2[%c0, %c0_0] : memref<8x4xf32, #tpu.memory_space<vmem>>, vector<8x4xf32>
    %c0_i32 = arith.constant 0 : i32
    %1 = arith.cmpi eq, %arg1, %c0_i32 : i32
    %2 = arith.extui %1 : i1 to i32
    %c0_i32_1 = arith.constant 0 : i32
    %3 = arith.cmpi ne, %2, %c0_i32_1 : i32
    scf.if %3 {
      %cst_20 = arith.constant 0.000000e+00 : f32
      %30 = vector.broadcast %cst_20 : f32 to vector<8x128xf32>
      %c0_21 = arith.constant 0 : index
      %c0_22 = arith.constant 0 : index
      %31 = vector.load %arg8[%c0_21, %c0_22] : memref<8x128xf32, #tpu.memory_space<vmem>>, vector<8x128xf32>
      tpu.vector_store %arg8[%c0_21, %c0_22], %30 {strides = array<i32>} : memref<8x128xf32, #tpu.memory_space<vmem>>, vector<8x128xf32>,
      %c0_23 = arith.constant 0 : index
      %c0_24 = arith.constant 0 : index
      %32 = vector.load %arg5[%c0_23, %c0_24] : memref<4x1xf32, #tpu.memory_space<vmem>>, vector<4x1xf32>
      %cst_25 = arith.constant dense<0.000000e+00> : vector<8x1xf32>
      %33 = tpu.matmul %0, %32, %cst_25 {dimension_numbers = #tpu.dot_dimension_numbers<[1], [0], [0], [1], [0, 0, 1, 1], [], []>} : vector<8x4xf32>, vector<4x1xf32>, vector<8x1xf32> -> vector<8x1xf32>
      %34 = math.exp %33 : vector<8x1xf32>
      %c0_26 = arith.constant 0 : index
      %c0_27 = arith.constant 0 : index
      %35 = vector.load %arg9[%c0_26, %c0_27] : memref<8x1xf32, #tpu.memory_space<vmem>>, vector<8x1xf32>
      tpu.vector_store %arg9[%c0_26, %c0_27], %34 {strides = array<i32>} : memref<8x1xf32, #tpu.memory_space<vmem>>, vector<8x1xf32>,
    } else {
    }
    %c0_2 = arith.constant 0 : index
    %c0_3 = arith.constant 0 : index
    %4 = vector.load %arg6[%c0_2, %c0_3] : memref<8x128xf32, #tpu.memory_space<vmem>>, vector<8x128xf32>
    %c0_4 = arith.constant 0 : index
    %c0_5 = arith.constant 0 : index
    %5 = vector.load %arg9[%c0_4, %c0_5] : memref<8x1xf32, #tpu.memory_space<vmem>>, vector<8x1xf32>
    %c0_6 = arith.constant 0 : index
    %c0_7 = arith.constant 0 : index
    %c0_8 = arith.constant 0 : index
    %6 = vector.load %arg3[%c0_6, %c0_7, %c0_8] : memref<1x4x128xf32, #tpu.memory_space<vmem>>, vector<1x4x128xf32>
    %7 = vector.shape_cast %6 : vector<1x4x128xf32> to vector<4x128xf32>
    %cst = arith.constant dense<0.000000e+00> : vector<8x128xf32>
    %8 = tpu.matmul %0, %7, %cst {dimension_numbers = #tpu.dot_dimension_numbers<[1], [0], [0], [1], [0, 0, 1, 1], [], []>} : vector<8x4xf32>, vector<4x128xf32>, vector<8x128xf32> -> vector<8x128xf32>
    %c0_9 = arith.constant 0 : index
    %c0_10 = arith.constant 0 : index
    %c0_11 = arith.constant 0 : index
    %9 = vector.load %arg4[%c0_9, %c0_10, %c0_11] : memref<1x4x1xf32, #tpu.memory_space<vmem>>, vector<1x4x1xf32>
    %10 = vector.shape_cast %9 : vector<1x4x1xf32> to vector<4x1xf32>
    %cst_12 = arith.constant dense<0.000000e+00> : vector<8x1xf32>
    %11 = tpu.matmul %0, %10, %cst_12 {dimension_numbers = #tpu.dot_dimension_numbers<[1], [0], [0], [1], [0, 0, 1, 1], [], []>} : vector<8x4xf32>, vector<4x1xf32>, vector<8x1xf32> -> vector<8x1xf32>
    %12 = arith.subf %4, %8 : vector<8x128xf32>
    %13 = arith.mulf %12, %12 : vector<8x128xf32>
    %cst_13 = arith.constant dense<0.000000e+00> : vector<8xf32>
    %14 = vector.multi_reduction <add>, %13, %cst_13 [1] : vector<8x128xf32> to vector<8xf32>
    %15 = vector.shape_cast %14 : vector<8xf32> to vector<8x1xf32>
    %16 = arith.mulf %11, %5 : vector<8x1xf32>
    %cst_14 = arith.constant 0.000000e+00 : f32
    %17 = vector.broadcast %cst_14 : f32 to vector<8x1xf32>
    %18 = arith.subf %17, %5 : vector<8x1xf32>
    %19 = arith.mulf %18, %15 : vector<8x1xf32>
    %20 = math.exp %19 : vector<8x1xf32>
    %21 = arith.mulf %16, %20 : vector<8x1xf32>
    %c0_15 = arith.constant 0 : index
    %c0_16 = arith.constant 0 : index
    %22 = vector.load %arg8[%c0_15, %c0_16] : memref<8x128xf32, #tpu.memory_space<vmem>>, vector<8x128xf32>
    %23 = vector.broadcast %21 : vector<8x1xf32> to vector<8x128xf32>
    %24 = arith.mulf %23, %12 : vector<8x128xf32>
    %25 = arith.addf %22, %24 : vector<8x128xf32>
    %c0_17 = arith.constant 0 : index
    %c0_18 = arith.constant 0 : index
    %26 = vector.load %arg8[%c0_17, %c0_18] : memref<8x128xf32, #tpu.memory_space<vmem>>, vector<8x128xf32>
    tpu.vector_store %arg8[%c0_17, %c0_18], %25 {strides = array<i32>} : memref<8x128xf32, #tpu.memory_space<vmem>>, vector<8x128xf32>,
    %c3_i32 = arith.constant 3 : i32
    %27 = arith.cmpi eq, %arg1, %c3_i32 : i32
    %28 = arith.extui %27 : i1 to i32
    %c0_i32_19 = arith.constant 0 : i32
    %29 = arith.cmpi ne, %28, %c0_i32_19 : i32
    scf.if %29 {
      %c0_20 = arith.constant 0 : index
      %c0_21 = arith.constant 0 : index
      %30 = vector.load %arg8[%c0_20, %c0_21] : memref<8x128xf32, #tpu.memory_space<vmem>>, vector<8x128xf32>
      %cst_22 = arith.constant 0.000000e+00 : f32
      %31 = vector.broadcast %cst_22 : f32 to vector<8x128xf32>
      %32 = arith.subf %31, %30 : vector<8x128xf32>
      %33 = arith.mulf %32, %32 : vector<8x128xf32>
      %cst_23 = arith.constant dense<0.000000e+00> : vector<8xf32>
      %34 = vector.multi_reduction <add>, %33, %cst_23 [1] : vector<8x128xf32> to vector<8xf32>
      %35 = vector.shape_cast %34 : vector<8xf32> to vector<8x1xf32>
      %36 = math.rsqrt %35 : vector<8x1xf32>
      %37 = vector.broadcast %36 : vector<8x1xf32> to vector<8x128xf32>
      %38 = arith.mulf %32, %37 : vector<8x128xf32>
      %c0_24 = arith.constant 0 : index
      %c0_25 = arith.constant 0 : index
      %39 = vector.load %arg7[%c0_24, %c0_25] : memref<8x128xf32, #tpu.memory_space<vmem>>, vector<8x128xf32>
      tpu.vector_store %arg7[%c0_24, %c0_25], %38 {strides = array<i32>} : memref<8x128xf32, #tpu.memory_space<vmem>>, vector<8x128xf32>,
    } else {
    }
    return
  }
  func.func @transform_0(%arg0: i32, %arg1: i32) -> (i32, i32) {
    %c0_i32 = arith.constant 0 : i32
    %c0_i32_0 = arith.constant 0 : i32
    return %arg0, %c0_i32 : i32, i32
  }
  func.func @transform_1(%arg0: i32, %arg1: i32) -> (i32, i32, i32) {
    %c0_i32 = arith.constant 0 : i32
    %c0_i32_0 = arith.constant 0 : i32
    %c0_i32_1 = arith.constant 0 : i32
    return %arg1, %c0_i32, %c0_i32_0 : i32, i32, i32
  }
  func.func @transform_2(%arg0: i32, %arg1: i32) -> (i32, i32, i32) {
    %c0_i32 = arith.constant 0 : i32
    %c0_i32_0 = arith.constant 0 : i32
    %c0_i32_1 = arith.constant 0 : i32
    return %arg1, %c0_i32, %c0_i32_0 : i32, i32, i32
  }
  func.func @transform_3(%arg0: i32, %arg1: i32) -> (i32, i32) {
    %c0_i32 = arith.constant 0 : i32
    %c0_i32_0 = arith.constant 0 : i32
    %c0_i32_1 = arith.constant 0 : i32
    return %c0_i32, %c0_i32_0 : i32, i32
  }
  func.func @transform_4(%arg0: i32, %arg1: i32) -> (i32, i32) {
    %c0_i32 = arith.constant 0 : i32
    %c0_i32_0 = arith.constant 0 : i32
    return %arg0, %c0_i32 : i32, i32
  }
  func.func @transform_5(%arg0: i32, %arg1: i32) -> (i32, i32) {
    %c0_i32 = arith.constant 0 : i32
    %c0_i32_0 = arith.constant 0 : i32
    return %arg0, %c0_i32 : i32, i32
  }
}

</mosaic_0001>

<bundles_post_ra>
// kernel: tpu_custom_call.1
= control target key start
LH: loop header
LB: loop body
LE: loop exit
PB: predicated region body
PF: predicated region fallthrough
CT: control target
= control target key end

     0   :  { %10 = vsyncpa [#allocation5], 0  ;;  %s1086_s0 = inlined_call_operand.vmem [shape: f32[16,4], index: 0, kind: input, shape index: {}]   ;;  %s1087_s1 = inlined_call_operand.vmem [shape: f32[4,4,128], index: 1, kind: input, shape index: {}]   ;;  %s1088_s2 = inlined_call_operand.vmem [shape: f32[4,4,1], index: 2, kind: input, shape index: {}]   ;;  %s1089_s3 = inlined_call_operand.vmem [shape: f32[4,1], index: 3, kind: input, shape index: {}]   ;;  %s1090_s4 = inlined_call_operand.vmem [shape: f32[16,128], index: 4, kind: input, shape index: {}]   ;;  %s1091_s5 = inlined_call_operand.hbm [shape: f32[16,128], index: 5, kind: output, shape index: {}]  }
   0x1   :  { %12 = vsyncpa [#allocation5 + $0x1], 0  ;;  %s934_s18 = smov 0   ;;  %s936_s19 = smov 0  }
   0x2   :  { %s938_s20 = smov 0   ;;  %s940_s21 = smov 0  }
   0x3   :  { %s942_s22 = smov 0   ;;  %s944_s23 = smov 0  }
   0x4   :  { %s946_s24 = smov 0   ;;  %s948_s25 = smov 0  }
   0x5 LB: > { %1096 = sst [smem:[#allocation7_spill]] %s888_s23  ;;  %s678_s26 = sadd.s32 4294967295, %s896_s25   ;;  %s896_s25 = sphi %s948_s25, %s18_s25   ;;  %s892_s24 = sphi %s946_s24, %s1108_s24   ;;  %s888_s23 = sphi %s944_s23, %s1112_s23   ;;  %s884_s22 = sphi %s942_s22, %s1106_s22   ;;  %s880_s21 = sphi %s940_s21, %s1105_s21   ;;  %s876_s20 = sphi %s938_s20, %s1111_s20   ;;  %s872_s19 = sphi %s936_s19, %s1110_s19   ;;  %s868_s18 = sphi %s934_s18, %s1109_s18  }
   0x6   : > { %1097 = sst [smem:[#allocation8_spill]] %s892_s24  ;;  %s679_s27 = sadd.s32 4294967294, %s896_s25  }
   0x7   : > { %s27_s28 = sadd.s32 1, %s888_s23  ;;  %s30_s29 = sadd.s32 1, %s892_s24 }
   0x8   : > { %p28_p0 = scmp.ge.s32.totalorder %s27_s28, 4  ;;  %p172_p1 = scmp.ne.s32.totalorder %s876_s20, %s872_s19 }
   0x9   : > { %p173_p2 = scmp.eq.s32.totalorder %s678_s26, 7  ;;  %p178_p4 = scmp.ne.s32.totalorder %s872_s19, %s868_s18 }
   0xa   : > { %s1114_s28 = smov (%p28_p0, %s27_s28), 0  ;;  %s1116_s29 = smov (!%p28_p0, %s30_s29), %s892_s24 }
   0xb   : > { %1098 = sst [smem:[#allocation9_spill]] %s1114_s28  ;;  %p983_p3 = por %p173_p2, %p172_p1 }
   0xc   : > { %p32_p5 = scmp.ge.s32.totalorder %s1116_s29, 2  ;;  %p179_p6 = scmp.eq.s32.totalorder %s679_s27, 7 }
   0xd   : > { %p682_p7 = scmp.ge.s32.totalorder %s896_s25, 1  ;;  %p228_p8 = scmp.lt.s32.totalorder %s896_s25, 9 }
   0xe   : > { %s1118_s29 = smov (%p32_p5, %s1116_s29), 0  ;;  %p993_p9 = por %p179_p6, %p178_p4 }
   0xf   : > { %1100 = sst [smem:[#allocation10_spill]] %s1118_s29  ;;  %p229_p10 = pnand %p682_p7, %p228_p8 }
  0x10   : > { %s159_s7 = ssub.s32 %s892_s24, %s1118_s29  ;;  %s162_s8 = sadd.s32 1, %s876_s20 }
  0x11   : > { %p160_p11 = scmp.eq.s32.totalorder %s159_s7, 0  ;;  %232 = sbr.rel (%p229_p10) target bundleno = 922 (0x39a), region = 40 }
  0x12   : > { %s1094_s10 = sand.u32 (!%p229_p10), 1, %s872_s19   ;;  %p267_p12 = scmp.lt.s32.totalorder (!%p229_p10), %s884_s22, 1 }
  0x13   : > { %s1001_s9 = scalar_select %p160_p11, %s876_s20, %s162_s8  }
  0x14   : > { %s1007_s11 = sshll.u32 (!%p229_p10), %s1094_s10, 3  ;;  %p271_p13 = scmp.lt.s32.totalorder (!%p229_p10), %s880_s21, 3 }
  0x15   : > { %1102 = sst [smem:[#allocation11_spill]] %s1001_s9  ;;  %p688_p0 = scmp.ne.s32.totalorder (!%p229_p10), %s880_s21, 0 }
  0x16   : > { %s268_s12 = scalar_select %p267_p12, %s884_s22, 1 }
  0x17   : > { %s272_s13 = scalar_select %p271_p13, %s880_s21, 3 }
  0x18   : > { %s684_s14 = sshll.u32 %s268_s12, 3  ;;  %s266_s12 = scalar_lea.vmem [#allocation4], %s1007_s11 }
  0x19   : > { %s270_s17 = scalar_lea.vmem %s1086_s0, %s684_s14  ;;  %s685_s26 = sshll.u32 %s272_s13, 2 }
  0x1a   : > { %s274_s8 = scalar_lea.vmem %s1087_s1, %s685_s26  ;;  %s1021_s24 = scalar_lea.vmem %s1088_s2, %s685_s26  ;;  %v283_v0 = vld [vmem:[%s270_s17] sm:$0xff] }
  0x1b   : > { %s1026_s9 = scalar_lea.vmem %s1090_s4, %s684_s14  ;;  %287 = sbr.rel (%p688_p0) target bundleno = 245 (0xf5), region = 44 }
  0x20   : > { %v289_v1 = vld [vmem:[%s1089_s3] sm:$0xf]  ;;  %vm294_vm0 = vcmask 1043456   ;;  %vm290_vm1 = vcmask 31744   ;;  %v898_v2 = vmov 0.0   ;;  %vm899_vm2 = vmmov 0  }
  0x21   : > { %288 = vst [vmem:[#allocation2] sm:$0xff] %v898_v2  ;;  %706 = vmatprep.subr.mxu0 %v898_v2  ;;  %708 = vmatprep.mubr.msk.f32.mxu0 %vm899_vm2, %v898_v2  ;;  %vm370_vm3 = vcmask 7168  }
  0x22   : > { %707 = vmatpush3.msk.msra.mxu0 %vm294_vm0, %v289_v1 }
  0x23   : > { %709 = vmatmul.mubr.msk.f32.vlgmr.msra.gmra.mxu0 %vm290_vm1, %v283_v0 }
  0xe3   : > { %v364_v3 = vpop.f32.mrf.mxu0 }
  0xe4   : > { %v368_v4 = vmul.f32 1.442695, %v364_v3 }
  0xe5   : > { %v710_v5 = vpop.f32.mrf.mxu0 }
  0xe6   : > { %797 = vpow2.f32 %v368_v4 }
  0xf3   : > { %v798_v6 = vpop.eup %797 }
  0xf4   : > { %371 = vst.msk [vmem:[#allocation3] sm:$0xff] %vm370_vm3, %v798_v6 }
  0xf5 PF: > { %v374_v7 = vld [vmem:[%s274_s8] sm:$0xf]  ;;  %vm379_vm4 = vcmask 1043456   ;;  %vm375_vm5 = vcmask 31744   ;;  %v900_v8 = vmov 0.0   ;;  %vm901_vm6 = vmmov 0  }
  0xf6   : > { %711 = vmatprep.subr.mxu0 %v900_v8  ;;  %713 = vmatprep.mubr.msk.f32.mxu0 %vm901_vm6, %v900_v8  ;;  %v453_v9 = vld [vmem:[%s1021_s24] sm:$0xf]  ;;  %v902_v17 = vmov 0   ;;  %p695_p1 = scmp.ne.s32.totalorder %s880_s21, 3 }
  0xf7   : > { %712 = vmatpush3.msk.msra.mxu0 %vm379_vm4, %v374_v7  ;;  %716 = vmatprep.subr.mxu1 %v900_v8  ;;  %v372_v10 = vld [vmem:[%s1026_s9] sm:$0xff] }
  0xf8   : > { %714 = vmatmul.mubr.msk.f32.vlgmr.msra.gmra.mxu0 %vm375_vm5, %v283_v0  ;;  %717 = vmatpush3.msk.msra.mxu1 %vm379_vm4, %v453_v9  ;;  %v537_v26 = vld [vmem:[#allocation2] sm:$0xff] }
  0xf9   : > { %718 = vmatprep.mubr.msk.f32.mxu1 %vm901_vm6, %v900_v8  ;;  %799 = vset.pattern.permute.xlu0 %v902_v17 }
  0xfa   : > { %719 = vmatmul.mubr.msk.f32.vlgmr.msra.gmra.mxu1 %vm375_vm5, %v283_v0 }
  0xfb   : > { %v373_v18 = vld [vmem:[#allocation3] sm:$0xff] }
  0xfc   : > { %v532_v19 = vsub.f32 0.0, %v373_v18 }
 0x1b8   : > { %v449_v11 = vpop.f32.mrf.mxu0 }
 0x1b9   : > { %v527_v12 = vsub.f32 %v372_v10, %v449_v11 }
 0x1ba   : > { %v715_v13 = vpop.f32.mrf.mxu0  ;;  %v523_v15 = vpop.f32.mrf.mxu1 }
 0x1bb   : > { %v528_v14 = vmul.f32 %v527_v12, %v527_v12  ;;  %v531_v23 = vmul.f32 %v523_v15, %v373_v18 }
 0x1bc   : > { %v720_v16 = vpop.f32.mrf.mxu1 }
 0x1bd   : > { %529 = vadd.xlane.f32.xlu0 %v528_v14 }
 0x246   : > { %v530_v20 = vpop.xlane.xlu0 %529 }
 0x247   : > { %v533_v21 = vmul.f32 %v532_v19, %v530_v20 }
 0x249   : > { %v534_v22 = vmul.f32 1.442695, %v533_v21 }
 0x24b   : > { %800 = vpow2.f32 %v534_v22 }
 0x258   : > { %v801_v24 = vpop.eup %800 }
 0x259   : > { %v536_v25 = vmul.f32 %v801_v24, %v531_v23 }
 0x25b   : > { %540 = vperm.xlu0 %799, %v536_v25  }
 0x2d6   : > { %v541_v27 = vpop.permute.xlu0 %540 }
 0x2d7   : > { %v543_v28 = vmul.f32 %v541_v27, %v527_v12  ;;  %549 = sbr.rel (%p695_p1) target bundleno = 898 (0x382), region = 48 }
 0x2d9   : > { %v544_v29 = vadd.f32 %v543_v28, %v537_v26 }
 0x2db   : > { %545 = vst [vmem:[#allocation2] sm:$0xff] %v544_v29 }
 0x2e2   : > { %v550_v30 = vld [vmem:[#allocation2] sm:$0xff] }
 0x2e3   : > { %v551_v31 = vsub.f32 0.0, %v550_v30 }
 0x2e5   : > { %v552_v32 = vmul.f32 %v551_v31, %v551_v31 }
 0x2e7   : > { %553 = vadd.xlane.f32.xlu0 %v552_v32 }
 0x370   : > { %v554_v33 = vpop.xlane.xlu0 %553 }
 0x371   : > { %802 = vrsqrt.f32 %v554_v33 }
 0x37e   : > { %v803_v34 = vpop.eup %802 }
 0x37f   : > { %v556_v35 = vmul.f32 %v803_v34, %v551_v31 }
 0x381   : > { %557 = vst [vmem:[%s266_s12] sm:$0xff] %v556_v35 }
 0x382 PF: > { %s697_s23 = sshll.u32 %s884_s22, 7  ;;  %s572_s29 = sshll.u32 %s266_s12, 4  ;;  %s573_s29 = int_to_ptr.vmem [resolvable:$true] %s572_s29 }
 0x383   : > { %s570_s28 = scalar_lea.hbm %s1091_s5, %s697_s23  ;;  %s1103_s9 = sand.u32 1, %s872_s19  }
 0x384   : > { %s559_s10 = scalar_lea.sflag [#allocation5], %s1103_s9  ;;  %s804_s14 = scalar_lea.vmem %s573_s29, 128 }
 0x385   : > { %p805_p2 = scmp.ne.s32.totalorder %s573_s29, %s804_s14  ;;  %s903_s16 = smov [#allocation4]  }
 0x386   : > { %s808_s17 = sshll.u32 %s903_s16, 4  ;;  %s809_s17 = int_to_ptr.vmem [resolvable:$false] %s808_s17 }
 0x387   : > { %p806_p4 = pnand %p805_p2, %p983_p3  ;;  %s810_s26 = scalar_lea.vmem %s809_s17, 256 }
 0x388   : > { %p811_p6 = scmp.lt.s32.totalorder %s573_s29, %s809_s17  ;;  %p812_p7 = scmp.lt.s32.totalorder %s810_s26, %s804_s14 }
 0x389   : > { %p807_p5 = pneg %p806_p4 }
 0x38a   : > { %p813_p8 = por %p812_p7, %p811_p6 }
 0x38c   : > { %p814_p10 = pnand %p813_p8, %p807_p5 }
 0x38e   : > { %817 = shalt.err (!%p814_p10)
}
 0x38f   : > { %s818_s22 = scalar_lea.hbm %s570_s28, 128  ;;  %s822_s7 = scalar_lea.hbm %s1091_s5, 256 }
 0x390   : > { %p819_p11 = scmp.ne.s32.totalorder %s570_s28, %s818_s22  ;;  %p823_p0 = scmp.lt.s32.totalorder %s570_s28, %s1091_s5 }
 0x391   : > { %p824_p1 = scmp.lt.s32.totalorder %s822_s7, %s818_s22 }
 0x392   : > { %p820_p12 = pnand %p819_p11, %p983_p3 }
 0x393   : > { %p825_p2 = por %p824_p1, %p823_p0 }
 0x394   : > { %p821_p13 = pneg %p820_p12 }
 0x396   : > { %p826_p4 = pnand %p825_p2, %p821_p13 }
 0x398   : > { %829 = shalt.err (!%p826_p4)
}
 0x399   : > { %721 = dma.vmem_to_hbm [thread:$0]  (%p983_p3), %s573_s29, 128, %s570_s28, %s559_s10  }
 0x39a PF: > { %p727_p5 = scmp.ge.s32.totalorder %s896_s25, 2  ;;  %s584_s13 = sand.u32 1, %s868_s18  }
 0x39b   : > { %s585_s15 = scalar_lea.sflag [#allocation5], %s584_s13 }
 0x39c   : > { %p724_p6 = pnand %p727_p5, %p993_p9 }
 0x39e   : > { %p725_p7 = pneg %p724_p6 }
 0x3a0   : > { %863 = dma.done.wait (%p725_p7), %s585_s15, 128  }
 0x3a1   : > { %865 = vsyncadd (%p725_p7), %s585_s15, 4294967168  ;;  %s18_s25 = sadd.s32 1, %s896_s25   ;;  %s1104_s23 = sld [smem:[#allocation11_spill]] }
 0x3a2   : > { %p15_p8 = scmp.ge.s32.totalorder %s18_s25, 10   ;;  %s1105_s21 = sld [smem:[#allocation7_spill]] }
 0x3a3   : > { %s1106_s22 = sld [smem:[#allocation8_spill]]  ;;  %s1109_s18 = smov %s872_s19 }
 0x3a4   : > { %s1107_s30 = sld [smem:[#allocation9_spill]]  ;;  %s1110_s19 = smov %s876_s20 }
 0x3a5   : > { %s1108_s24 = sld [smem:[#allocation10_spill]] }
 0x3a6   :  { %17 = sbr.rel (!%p15_p8) target bundleno = 5 (0x5), region = 92 }
 0x3a7   : > { %s1111_s20 = smov %s1104_s23 }
 0x3aa   : > { %s1112_s23 = smov %s1107_s30 }
 0x3ab   :  { %590 = vsyncpa [#allocation5], 1 }
 0x3ac   :  { %592 = vsyncpa [#allocation5 + $0x1], 1 }

</bundles_post_ra>
